<compile_context>
chip_gen: v5e
topology: v5e:2x2
jax: 0.10.0
libtpu: 0.0.40
codegen_flags: <defaults>
</compile_context>

<pallas_src>
import jax
import jax.numpy as jnp
from jax.experimental import pallas as pl
from jax.experimental.pallas import tpu as pltpu


def _round_up(x, m):
    return (x + m - 1) // m * m


def _fused_matmul_kernel(x_ref, w_ref, o_ref):
    # One lane-dense MXU matmul per batch tile; the bias is folded into W via
    # the ones column appended to x, so there is no separate VPU add and no
    # masked partial store on the output.
    o_ref[...] = jnp.dot(
        x_ref[...], w_ref[...], preferred_element_type=jnp.float32
    ).astype(o_ref.dtype)


def concatenative_fusion(xs, params, *, max_batch_tile=256,
                         vmem_budget_bytes=24 * 1024 * 1024):
    """xs: dict key -> (B, D_in_k); params: dict key -> (W_k, b_k).

    Returns cat([x_k @ W_k + b_k for k], axis=1) in dict-key order, matching
    ConcatenativeFusion.forward.
    """
    keys = list(xs.keys())
    B = xs[keys[0]].shape[0]
    dtype = xs[keys[0]].dtype

    d_ins = [int(params[k][0].shape[0]) for k in keys]
    h_ks = [int(params[k][0].shape[1]) for k in keys]
    D_total = sum(d_ins)
    H_total = sum(h_ks)

    # Lane-dense padded sizes (+1 input column of ones for the folded bias).
    D_pad = _round_up(D_total + 1, 128)
    H_pad = _round_up(H_total, 128)

    # ---- host-side fusion prep (would normally happen once at init) -------
    # Block-diagonal fused weight, with the biases folded in as row D_total.
    W_fused = jnp.zeros((D_pad, H_pad), dtype=dtype)
    r = 0
    c = 0
    for k in keys:
        W, b = params[k]
        d, h = int(W.shape[0]), int(W.shape[1])
        W_fused = W_fused.at[r:r + d, c:c + h].set(W.astype(dtype))
        W_fused = W_fused.at[D_total, c:c + h].set(b.reshape(-1).astype(dtype))
        r += d
        c += h

    # Concatenated input + ones column (bias), zero-padded to (B_pad, D_pad).
    x_cat = jnp.concatenate([xs[k] for k in keys], axis=1)       # (B, D_total)
    x_aug = jnp.concatenate(
        [x_cat, jnp.ones((B, 1), dtype=dtype)], axis=1)          # (B, D_total+1)

    # ---- batch tiling ------------------------------------------------------
    bytes_per = jnp.dtype(dtype).itemsize
    TB = min(max_batch_tile, _round_up(B, 8))
    TB = max(8, _round_up(TB, 8))

    def footprint(tb):
        # 2x double-buffered x/out tiles + (conservatively 2x) resident weight.
        return (2 * tb * (D_pad + H_pad) + 2 * D_pad * H_pad) * bytes_per

    while TB > 8 and footprint(TB) > vmem_budget_bytes:
        TB = max(8, _round_up(TB // 2, 8))

    B_pad = _round_up(B, TB)
    x_pad = jnp.zeros((B_pad, D_pad), dtype=dtype).at[
        :B, :D_total + 1].set(x_aug)

    n_tiles = B_pad // TB
    vmem_limit = int(min(max(footprint(TB) + (2 << 20), 16 << 20), 48 << 20))

    out_pad = pl.pallas_call(
        _fused_matmul_kernel,
        out_shape=jax.ShapeDtypeStruct((B_pad, H_pad), dtype),
        grid=(n_tiles,),
        in_specs=[
            # Batch-tiled activations: double-buffered across grid steps.
            pl.BlockSpec((TB, D_pad), lambda i: (i, 0)),
            # Fused weight: constant block, DMA'd once, VMEM-resident.
            pl.BlockSpec((D_pad, H_pad), lambda i: (0, 0)),
        ],
        out_specs=pl.BlockSpec((TB, H_pad), lambda i: (i, 0)),
        compiler_params=pltpu.CompilerParams(
            dimension_semantics=("parallel",),
            vmem_limit_bytes=vmem_limit,
        ),
    )(x_pad, W_fused)

    # Strip the batch / lane padding.
    return out_pad[:B, :H_total]


def _reference(xs, params):
    outs = []
    for k in xs.keys():
        W, b = params[k]
        outs.append(jnp.dot(xs[k], W) + b)
    return jnp.concatenate(outs, axis=1)


if __name__ == "__main__":
    key = jax.random.PRNGKey(0)

    # Two synthetic "backends":
    #   "a": D_in=16 -> hidden_size=32
    #   "b": D_in=24 -> hidden_size=16
    batch = 2
    backend_dims = {"a": (16, 32), "b": (24, 16)}

    params = {}
    xs = {}
    for name, (d_in, h) in backend_dims.items():
        key, kx, kw, kb = jax.random.split(key, 4)
        xs[name] = jax.random.normal(kx, (batch, d_in), dtype=jnp.float32)
        W = jax.random.normal(kw, (d_in, h), dtype=jnp.float32) * 0.05
        b = jax.random.normal(kb, (1, h), dtype=jnp.float32) * 0.01
        params[name] = (W, b)

    out = concatenative_fusion(xs, params)
    out = jax.block_until_ready(out)

    ref = _reference(xs, params)
    assert out.shape == (batch, sum(h for _, h in backend_dims.values()))
    assert jnp.allclose(out, ref, atol=1e-5, rtol=1e-5)

    print("KERNEL_OK")
</pallas_src>

<mosaic_0001>
module attributes {stable_mosaic.version = 11 : i64} {
  func.func @_fused_matmul_kernel(%arg0: i32, %arg1: memref<8x128xf32, #tpu.memory_space<vmem>>, %arg2: memref<128x128xf32, #tpu.memory_space<vmem>>, %arg3: memref<8x128xf32, #tpu.memory_space<vmem>>) attributes {dimension_semantics = [#tpu.dimension_semantics<parallel>], iteration_bounds = array<i64: 1>, scalar_prefetch = 0 : i64, scratch_operands = 0 : i64, tpu.core_type = #tpu.core_type<tc>, window_params = [{transform_indices = @transform_0, window_bounds = array<i64: 8, 128>}, {pipeline_mode = #tpu.pipeline_mode<synchronous>, transform_indices = @transform_1, window_bounds = array<i64: 128, 128>}, {transform_indices = @transform_2, window_bounds = array<i64: 8, 128>}]} {
    %c0 = arith.constant 0 : index
    %c0_0 = arith.constant 0 : index
    %0 = vector.load %arg1[%c0, %c0_0] : memref<8x128xf32, #tpu.memory_space<vmem>>, vector<8x128xf32>
    %c0_1 = arith.constant 0 : index
    %c0_2 = arith.constant 0 : index
    %1 = vector.load %arg2[%c0_1, %c0_2] : memref<128x128xf32, #tpu.memory_space<vmem>>, vector<128x128xf32>
    %cst = arith.constant dense<0.000000e+00> : vector<8x128xf32>
    %2 = tpu.matmul %0, %1, %cst {dimension_numbers = #tpu.dot_dimension_numbers<[1], [0], [0], [1], [0, 0, 1, 1], [], []>} : vector<8x128xf32>, vector<128x128xf32>, vector<8x128xf32> -> vector<8x128xf32>
    %c0_3 = arith.constant 0 : index
    %c0_4 = arith.constant 0 : index
    %3 = vector.load %arg3[%c0_3, %c0_4] : memref<8x128xf32, #tpu.memory_space<vmem>>, vector<8x128xf32>
    tpu.vector_store %arg3[%c0_3, %c0_4], %2 {strides = array<i32>} : memref<8x128xf32, #tpu.memory_space<vmem>>, vector<8x128xf32>,
    return
  }
  func.func @transform_0(%arg0: i32) -> (i32, i32) {
    %c0_i32 = arith.constant 0 : i32
    %c0_i32_0 = arith.constant 0 : i32
    return %arg0, %c0_i32 : i32, i32
  }
  func.func @transform_1(%arg0: i32) -> (i32, i32) {
    %c0_i32 = arith.constant 0 : i32
    %c0_i32_0 = arith.constant 0 : i32
    %c0_i32_1 = arith.constant 0 : i32
    return %c0_i32, %c0_i32_0 : i32, i32
  }
  func.func @transform_2(%arg0: i32) -> (i32, i32) {
    %c0_i32 = arith.constant 0 : i32
    %c0_i32_0 = arith.constant 0 : i32
    return %arg0, %c0_i32 : i32, i32
  }
}

</mosaic_0001>

<bundles_post_ra>
// kernel: tpu_custom_call.1
= control target key start
LH: loop header
LB: loop body
LE: loop exit
PB: predicated region body
PF: predicated region fallthrough
CT: control target
= control target key end

     0   :  { %7 = vsyncpa [#allocation3], 0  ;;  %s210_s0 = inlined_call_operand.hbm [shape: f32[8,128], index: 0, kind: input, shape index: {}]   ;;  %s211_s1 = inlined_call_operand.hbm [shape: f32[128,128], index: 1, kind: input, shape index: {}]   ;;  %s212_s2 = inlined_call_operand.hbm [shape: f32[8,128], index: 2, kind: output, shape index: {}]  }
   0x1   :  { %8 = vsyncpa [#allocation6], 0 }
   0x2   :  { %9 = vsyncpa [#allocation4], 0  ;;  %s15_s11 = sshll.u32 %s210_s0, 4  ;;  %s181_s12 = smov [#allocation2]   ;;  %s16_s11 = int_to_ptr.hbm [resolvable:$true] %s15_s11 }
   0x3   :  { %s17_s13 = sshll.u32 %s181_s12, 4  ;;  %s25_s16 = sshll.u32 %s211_s1, 4  ;;  %s18_s13 = int_to_ptr.vmem [resolvable:$true] %s17_s13  ;;  %s26_s16 = int_to_ptr.hbm [resolvable:$true] %s25_s16 }
   0x4   :  { %20 = dma.hbm_to_vmem [thread:$0]  %s16_s11, 128, %s18_s13, [#allocation3]  }
   0x5   :  { %s182_s17 = smov [#allocation5]   ;;  %s183_s19 = smov 128  }
   0x6   :  { %s27_s18 = sshll.u32 %s182_s17, 4  ;;  %s184_s20 = smov 8   ;;  %s28_s18 = int_to_ptr.vmem [resolvable:$true] %s27_s18 }
   0x7   :  { %33 = dma.hbm_to_vmem [thread:$0]  %s26_s16, 2048, %s28_s18, [#allocation6], %s183_s19, %s183_s19, %s184_s20  }
   0x8   :  { %175 = dma.done.wait [#allocation3], 128  }
   0x9   :  { %176 = vsyncadd [#allocation3], 4294967168 }
   0xa   :  { %177 = dma.done.wait [#allocation6], 2048  }
   0xb   :  { %178 = vsyncadd [#allocation6], 4294965248  ;;  %v58_v0 = vld [vmem:[#allocation5 + $0x78] sm:$0xff]  ;;  %v57_v1 = vld [vmem:[#allocation5 + $0x70] sm:$0xff]  ;;  %s185_s0 = smov [#allocation7]   ;;  %s87_s23 = sshll.u32 %s212_s2, 4  ;;  %s88_s23 = int_to_ptr.hbm [resolvable:$true] %s87_s23 }
   0xc   :  { %59 = vmatpush.msra.mxu0 %v58_v0  ;;  %v56_v2 = vld [vmem:[#allocation5 + $0x68] sm:$0xff]  ;;  %v55_v3 = vld [vmem:[#allocation5 + $0x60] sm:$0xff]  ;;  %v54_v4 = vld [vmem:[#allocation5 + $0x58] sm:$0xff]  ;;  %s85_s1 = sshll.u32 %s185_s0, 4  ;;  %s86_s1 = int_to_ptr.vmem [resolvable:$true] %s85_s1 }
   0xd   :  { %v53_v5 = vld [vmem:[#allocation5 + $0x50] sm:$0xff]  ;;  %v52_v6 = vld [vmem:[#allocation5 + $0x48] sm:$0xff]  ;;  %v51_v7 = vld [vmem:[#allocation5 + $0x40] sm:$0xff] }
   0xe   :  { %60 = vmatpush.msra.mxu0 %v57_v1  ;;  %v50_v8 = vld [vmem:[#allocation5 + $0x38] sm:$0xff]  ;;  %v49_v9 = vld [vmem:[#allocation5 + $0x30] sm:$0xff]  ;;  %v48_v10 = vld [vmem:[#allocation5 + $0x28] sm:$0xff] }
   0xf   :  { %v47_v11 = vld [vmem:[#allocation5 + $0x20] sm:$0xff]  ;;  %v46_v12 = vld [vmem:[#allocation5 + $0x18] sm:$0xff]  ;;  %v45_v13 = vld [vmem:[#allocation5 + $0x10] sm:$0xff] }
  0x10   :  { %61 = vmatpush.msra.mxu0 %v56_v2  ;;  %v44_v14 = vld [vmem:[#allocation5 + $0x8] sm:$0xff]  ;;  %v43_v15 = vld [vmem:[#allocation5] sm:$0xff]  ;;  %v42_v16 = vld [vmem:[#allocation2] sm:$0xff] }
  0x12   :  { %62 = vmatpush.msra.mxu0 %v55_v3 }
  0x14   :  { %63 = vmatpush.msra.mxu0 %v54_v4 }
  0x16   :  { %64 = vmatpush.msra.mxu0 %v53_v5 }
  0x18   :  { %65 = vmatpush.msra.mxu0 %v52_v6 }
  0x1a   :  { %66 = vmatpush.msra.mxu0 %v51_v7 }
  0x1c   :  { %67 = vmatpush.msra.mxu0 %v50_v8 }
  0x1e   :  { %68 = vmatpush.msra.mxu0 %v49_v9 }
  0x20   :  { %69 = vmatpush.msra.mxu0 %v48_v10 }
  0x22   :  { %70 = vmatpush.msra.mxu0 %v47_v11 }
  0x24   :  { %71 = vmatpush.msra.mxu0 %v46_v12 }
  0x26   :  { %72 = vmatpush.msra.mxu0 %v45_v13 }
  0x28   :  { %73 = vmatpush.msra.mxu0 %v44_v14 }
  0x2a   :  { %74 = vmatpush.msra.mxu0 %v43_v15 }
  0x2b   :  { %75 = vmatmul.f32.vlgmr.msra.gmra.mxu0 %v42_v16 }
  0xa8   :  { %v76_v17 = vpop.f32.mrf.mxu0 }
  0xa9   :  { %79 = vst [vmem:[#allocation7] sm:$0xff] %v76_v17 }
  0xaa   :  { %90 = dma.vmem_to_hbm [thread:$0]  %s86_s1, 128, %s88_s23, [#allocation4]  }
  0xab   :  { %179 = dma.done.wait [#allocation4], 128  }
  0xac   :  { %180 = vsyncadd [#allocation4], 4294967168 }
  0xad   :  { %95 = vsyncpa [#allocation3], 1 }
  0xae   :  { %96 = vsyncpa [#allocation6], 1 }
  0xaf   :  { %97 = vsyncpa [#allocation4], 1 }

</bundles_post_ra>
